<compile_context>
chip_gen: v7x
topology: tpu7x:2x2x1
jax: 0.10.0
libtpu: 0.0.40
codegen_flags: <defaults>
</compile_context>

<pallas_src>
import functools

import jax
import jax.numpy as jnp
import numpy as np
from jax.experimental import pallas as pl
from jax.experimental.pallas import tpu as pltpu


def _mixprop_kernel(aop_ref, x_ref, wblk_ref, bias_ref, o_ref, *,
                    gdep, alpha, matmul_dtype):
    """One batch-block of mixprop with (V, L) flattened onto the lane axis.

    aop_ref : [P, P]                    kron(a.T, I_L) (lane-padded), matmul dtype
    x_ref   : [B, C, P]                 input block, lanes = flattened (v, l)
    wblk_ref: [gdep+1, B*c_out, B*C]    kron(I_B, W_k^T) per hop, matmul dtype
    bias_ref: [B*c_out, 1]              f32
    o_ref   : [B, c_out, P]             lane-dense output block
    """
    B, C, P = x_ref.shape
    Bco = bias_ref.shape[0]
    c_out = Bco // B
    md = matmul_dtype if matmul_dtype is not None else jnp.float32

    def mm(lhs, rhs):
        return jnp.dot(lhs, rhs, preferred_element_type=jnp.float32)

    aop = aop_ref[...]                                   # [P, P], already `md`

    # Lanes stay in (v, l) order throughout: this reshape only merges leading
    # dims, so there is no XLU relayout (unlike the old swapaxes version).
    x2 = x_ref[...].reshape(B * C, P).astype(jnp.float32)     # f32 state
    h = x2
    h_mm = h.astype(md)                                  # cast once per hop

    # hop-0 contribution of the 1x1-conv "mlp", accumulated hop by hop in f32
    # (replaces the channel concat + one big matmul).
    acc = mm(wblk_ref[0], h_mm)                          # [B*c_out, P]
    for k in range(1, gdep + 1):
        hw = mm(h_mm, aop)                               # graph propagation (nconv)
        h = alpha * x2 + (1.0 - alpha) * hw              # f32 mix rides in VALU slack
        h_mm = h.astype(md)
        acc = acc + mm(wblk_ref[k], h_mm)

    acc = acc + bias_ref[...]                            # broadcast over lanes

    # rows are (b, o): splitting the leading dim is free; lanes untouched.
    o_ref[...] = acc.reshape(B, c_out, P).astype(o_ref.dtype)


def _footprint_bytes(B, C, c_out, P, gdep, x_bytes, md_bytes):
    """Rough per-grid-step VMEM footprint (double-buffered blocks + live temps)."""
    x_blk = B * C * P * x_bytes
    out_blk = B * c_out * P * x_bytes
    wblk = (gdep + 1) * (B * c_out) * (B * C) * md_bytes
    aop = P * P * md_bytes
    bias = B * c_out * 4
    temps = (3 * B * C * P + B * c_out * P) * 4          # x2 / h / hw + acc (f32)
    return 2 * (x_blk + out_blk + wblk + aop + bias) + temps


def _pick_batch_block(N, C, c_out, P, gdep, x_bytes, md_bytes, *,
                      target_rows=256, vmem_budget=40 << 20):
    """Largest divisor B of N such that:
       * the propagation matmul has at most `target_rows` rows (B*C) — 256 fills
         the v6e/v7x MXU, and v5e's 128 is a subset of it,
       * the grid keeps >= 2 steps whenever N >= 2 (uses both v7x TensorCores
         via the "parallel" axis and overlaps the x-block DMA with compute),
       * the per-step VMEM footprint stays within a v7x-safe budget (64 MiB
         physical VMEM on v7x vs 128 MiB on v5e/v6e).
    """
    min_blocks = 2 if N >= 2 else 1
    best = 1
    for d in range(1, N + 1):
        if N % d:
            continue
        if d * C > target_rows:
            continue
        if N // d < min_blocks:
            continue
        if _footprint_bytes(d, C, c_out, P, gdep, x_bytes, md_bytes) > vmem_budget:
            continue
        best = d
    return best


def mixprop_pallas(x_nchw, adj, w, b, *, gdep, alpha,
                   batch_block=None, matmul_dtype=None):
    """x_nchw: [N, C, V, L], adj: [V, V], w: [(gdep+1)*C, c_out], b: [1, c_out]."""
    N, C, V, L = x_nchw.shape
    c_out = w.shape[1]
    md = matmul_dtype if matmul_dtype is not None else x_nchw.dtype

    # Lane-dense guard: flatten (V, L) onto lanes and pad up to a multiple of
    # 128 so the output store path uses unmasked `vst` (largest store-path lever).
    P = V * L
    P_pad = max(128, pl.cdiv(P, 128) * 128)

    x_bytes = jnp.dtype(x_nchw.dtype).itemsize
    md_bytes = jnp.dtype(md).itemsize
    if batch_block is not None:
        B = batch_block
        assert N % B == 0, "batch_block must divide N (no ragged-tail handling)"
    else:
        B = _pick_batch_block(N, C, c_out, P_pad, gdep, x_bytes, md_bytes)
    num_blocks = N // B

    # ---- one-time prep, hoisted out of the kernel (plain JAX) ----
    a = adj + jnp.eye(V, dtype=adj.dtype)
    a = a / a.sum(axis=1, keepdims=True)                 # row-normalize (adj + I)
    # Propagation operator on the flattened (v, l) lane axis:
    #   h_new[., v*L + l] = sum_w a[v, w] * h[., w*L + l]   <=>   h @ kron(a.T, I_L)
    aop = jnp.kron(a.T, jnp.eye(L, dtype=a.dtype))       # [P, P]
    if P_pad != P:
        aop = jnp.pad(aop, ((0, P_pad - P), (0, P_pad - P)))
    aop = aop.astype(md)

    eye_b = jnp.eye(B, dtype=w.dtype)
    wblk = jnp.stack([jnp.kron(eye_b, w[k * C:(k + 1) * C, :].T)
                      for k in range(gdep + 1)], axis=0).astype(md)  # [gdep+1, B*c_out, B*C]
    bias = jnp.tile(b.reshape(c_out, 1), (B, 1)).astype(jnp.float32)  # [B*c_out, 1]

    x_flat = x_nchw.reshape(N, C, P)                     # free, contiguous reshape
    if P_pad != P:
        x_flat = jnp.pad(x_flat, ((0, 0), (0, 0), (0, P_pad - P)))

    # Explicit scoped-VMEM limit so a larger B is never clamped to the small
    # default, while staying well inside v7x's 64 MiB physical VMEM.
    vmem_limit = int(min(max(2 * _footprint_bytes(B, C, c_out, P_pad, gdep,
                                                  x_bytes, md_bytes),
                             32 << 20), 48 << 20))

    kernel = functools.partial(_mixprop_kernel, gdep=gdep, alpha=alpha,
                               matmul_dtype=matmul_dtype)
    out = pl.pallas_call(
        kernel,
        out_shape=jax.ShapeDtypeStruct((N, c_out, P_pad), x_nchw.dtype),
        grid=(num_blocks,),
        in_specs=[
            # Grid-invariant operands (index (0, ...) every step): Pallas skips
            # the re-DMA; at these sizes their double-buffer residency is
            # negligible, so single-buffering (pl.Buffered(1)) is not needed.
            pl.BlockSpec((P_pad, P_pad), lambda i: (0, 0)),               # A_op (shared)
            pl.BlockSpec((B, C, P_pad), lambda i: (i, 0, 0)),             # x block
            pl.BlockSpec((gdep + 1, B * c_out, B * C), lambda i: (0, 0, 0)),
            pl.BlockSpec((B * c_out, 1), lambda i: (0, 0)),
        ],
        out_specs=pl.BlockSpec((B, c_out, P_pad), lambda i: (i, 0, 0)),   # lane-dense
        compiler_params=pltpu.CompilerParams(
            dimension_semantics=("parallel",),
            vmem_limit_bytes=vmem_limit),
    )(aop, x_flat, wblk, bias)

    if P_pad != P:
        out = out[:, :, :P]
    # free reshape (no HBM transpose): [N, c_out, V*L] -> NCHW [N, c_out, V, L]
    return out.reshape(N, c_out, V, L)


def mixprop_ref(x_nchw, adj, w, b, *, gdep, alpha):
    """Pure-JAX reference matching the PyTorch module semantics (NCHW)."""
    V = adj.shape[0]
    a = adj + jnp.eye(V, dtype=adj.dtype)
    a = a / a.sum(axis=1, keepdims=True)
    h = x_nchw
    out = [h]
    for _ in range(gdep):
        h = alpha * x_nchw + (1 - alpha) * jnp.einsum('ncwl,vw->ncvl', h, a)
        out.append(h)
    ho = jnp.concatenate(out, axis=1)                    # [N, (gdep+1)*C, V, L]
    y = jnp.einsum('nivl,io->novl', ho, w) + b.reshape(1, -1, 1, 1)
    return y


if __name__ == "__main__":
    # mixprop(c_in=4, c_out=8, gdep=2, dropout=0.3, alpha=0.05)
    # TODO(synk): dropout is constructed but never applied in mixprop.forward -> no-op here.
    N, C, V, L = 2, 4, 16, 8
    gdep, alpha, c_out = 2, 0.05, 8

    key = jax.random.PRNGKey(0)
    kx, ka, kw, kb = jax.random.split(key, 4)

    x = jax.random.normal(kx, (N, C, V, L), dtype=jnp.float32)        # NCHW input
    adj = jax.random.uniform(ka, (V, V), dtype=jnp.float32)           # adjacency
    w = jax.random.normal(kw, ((gdep + 1) * C, c_out), dtype=jnp.float32) * 0.1
    b = jax.random.normal(kb, (1, c_out), dtype=jnp.float32) * 0.1

    ref = jax.block_until_ready(mixprop_ref(x, adj, w, b, gdep=gdep, alpha=alpha))

    # 1) default f32 MXU operands: tight tolerance vs the PyTorch semantics.
    out = jax.block_until_ready(mixprop_pallas(x, adj, w, b, gdep=gdep, alpha=alpha))
    np.testing.assert_allclose(np.asarray(out), np.asarray(ref), rtol=1e-3, atol=1e-3)
    assert out.shape == (N, c_out, V, L)

    # 2) bf16 MXU operands (fast path on v5e/v6e/v7x), f32 accumulation.
    out_bf16 = jax.block_until_ready(
        mixprop_pallas(x, adj, w, b, gdep=gdep, alpha=alpha,
                       matmul_dtype=jnp.bfloat16))
    np.testing.assert_allclose(np.asarray(out_bf16), np.asarray(ref),
                               rtol=2e-2, atol=2e-2)

    # 3) non-128-aligned V*L exercises the lane-padding guard.
    V2, L2 = 10, 7
    x2 = jax.random.normal(kx, (N, C, V2, L2), dtype=jnp.float32)
    adj2 = jax.random.uniform(ka, (V2, V2), dtype=jnp.float32)
    out2 = jax.block_until_ready(
        mixprop_pallas(x2, adj2, w, b, gdep=gdep, alpha=alpha))
    ref2 = jax.block_until_ready(mixprop_ref(x2, adj2, w, b, gdep=gdep, alpha=alpha))
    np.testing.assert_allclose(np.asarray(out2), np.asarray(ref2), rtol=1e-3, atol=1e-3)

    print("KERNEL_OK")
</pallas_src>

<mosaic_0001>
module attributes {stable_mosaic.version = 11 : i64} {
  func.func @_mixprop_kernel(%arg0: i32, %arg1: memref<128x128xf32, #tpu.memory_space<vmem>>, %arg2: memref<1x4x128xf32, #tpu.memory_space<vmem>>, %arg3: memref<3x8x4xf32, #tpu.memory_space<vmem>>, %arg4: memref<8x1xf32, #tpu.memory_space<vmem>>, %arg5: memref<1x8x128xf32, #tpu.memory_space<vmem>>) attributes {dimension_semantics = [#tpu.dimension_semantics<parallel>], iteration_bounds = array<i64: 2>, scalar_prefetch = 0 : i64, scratch_operands = 0 : i64, tpu.core_type = #tpu.core_type<tc>, window_params = [{pipeline_mode = #tpu.pipeline_mode<synchronous>, transform_indices = @transform_0, window_bounds = array<i64: 128, 128>}, {transform_indices = @transform_1, window_bounds = array<i64: 1, 4, 128>}, {pipeline_mode = #tpu.pipeline_mode<synchronous>, transform_indices = @transform_2, window_bounds = array<i64: 3, 8, 4>}, {pipeline_mode = #tpu.pipeline_mode<synchronous>, transform_indices = @transform_3, window_bounds = array<i64: 8, 1>}, {transform_indices = @transform_4, window_bounds = array<i64: 1, 8, 128>}]} {
    %c0 = arith.constant 0 : index
    %c0_0 = arith.constant 0 : index
    %0 = vector.load %arg1[%c0, %c0_0] : memref<128x128xf32, #tpu.memory_space<vmem>>, vector<128x128xf32>
    %c0_1 = arith.constant 0 : index
    %c0_2 = arith.constant 0 : index
    %c0_3 = arith.constant 0 : index
    %1 = vector.load %arg2[%c0_1, %c0_2, %c0_3] : memref<1x4x128xf32, #tpu.memory_space<vmem>>, vector<1x4x128xf32>
    %2 = vector.shape_cast %1 : vector<1x4x128xf32> to vector<4x128xf32>
    %c0_4 = arith.constant 0 : index
    %c0_5 = arith.constant 0 : index
    %c0_6 = arith.constant 0 : index
    %3 = vector.load %arg3[%c0_4, %c0_5, %c0_6] : memref<3x8x4xf32, #tpu.memory_space<vmem>>, vector<1x8x4xf32>
    %4 = vector.shape_cast %3 : vector<1x8x4xf32> to vector<8x4xf32>
    %cst = arith.constant dense<0.000000e+00> : vector<8x128xf32>
    %5 = tpu.matmul %4, %2, %cst {dimension_numbers = #tpu.dot_dimension_numbers<[1], [0], [0], [1], [0, 0, 1, 1], [], []>} : vector<8x4xf32>, vector<4x128xf32>, vector<8x128xf32> -> vector<8x128xf32>
    %cst_7 = arith.constant dense<0.000000e+00> : vector<4x128xf32>
    %6 = tpu.matmul %2, %0, %cst_7 {dimension_numbers = #tpu.dot_dimension_numbers<[1], [0], [0], [1], [0, 0, 1, 1], [], []>} : vector<4x128xf32>, vector<128x128xf32>, vector<4x128xf32> -> vector<4x128xf32>
    %cst_8 = arith.constant 5.000000e-02 : f32
    %7 = vector.broadcast %cst_8 : f32 to vector<4x128xf32>
    %8 = arith.mulf %7, %2 : vector<4x128xf32>
    %cst_9 = arith.constant 0.949999988 : f32
    %9 = vector.broadcast %cst_9 : f32 to vector<4x128xf32>
    %10 = arith.mulf %9, %6 : vector<4x128xf32>
    %11 = arith.addf %8, %10 : vector<4x128xf32>
    %c1 = arith.constant 1 : index
    %c0_10 = arith.constant 0 : index
    %c0_11 = arith.constant 0 : index
    %12 = vector.load %arg3[%c1, %c0_10, %c0_11] : memref<3x8x4xf32, #tpu.memory_space<vmem>>, vector<1x8x4xf32>
    %13 = vector.shape_cast %12 : vector<1x8x4xf32> to vector<8x4xf32>
    %cst_12 = arith.constant dense<0.000000e+00> : vector<8x128xf32>
    %14 = tpu.matmul %13, %11, %cst_12 {dimension_numbers = #tpu.dot_dimension_numbers<[1], [0], [0], [1], [0, 0, 1, 1], [], []>} : vector<8x4xf32>, vector<4x128xf32>, vector<8x128xf32> -> vector<8x128xf32>
    %15 = arith.addf %5, %14 : vector<8x128xf32>
    %cst_13 = arith.constant dense<0.000000e+00> : vector<4x128xf32>
    %16 = tpu.matmul %11, %0, %cst_13 {dimension_numbers = #tpu.dot_dimension_numbers<[1], [0], [0], [1], [0, 0, 1, 1], [], []>} : vector<4x128xf32>, vector<128x128xf32>, vector<4x128xf32> -> vector<4x128xf32>
    %cst_14 = arith.constant 5.000000e-02 : f32
    %17 = vector.broadcast %cst_14 : f32 to vector<4x128xf32>
    %18 = arith.mulf %17, %2 : vector<4x128xf32>
    %cst_15 = arith.constant 0.949999988 : f32
    %19 = vector.broadcast %cst_15 : f32 to vector<4x128xf32>
    %20 = arith.mulf %19, %16 : vector<4x128xf32>
    %21 = arith.addf %18, %20 : vector<4x128xf32>
    %c2 = arith.constant 2 : index
    %c0_16 = arith.constant 0 : index
    %c0_17 = arith.constant 0 : index
    %22 = vector.load %arg3[%c2, %c0_16, %c0_17] : memref<3x8x4xf32, #tpu.memory_space<vmem>>, vector<1x8x4xf32>
    %23 = vector.shape_cast %22 : vector<1x8x4xf32> to vector<8x4xf32>
    %cst_18 = arith.constant dense<0.000000e+00> : vector<8x128xf32>
    %24 = tpu.matmul %23, %21, %cst_18 {dimension_numbers = #tpu.dot_dimension_numbers<[1], [0], [0], [1], [0, 0, 1, 1], [], []>} : vector<8x4xf32>, vector<4x128xf32>, vector<8x128xf32> -> vector<8x128xf32>
    %25 = arith.addf %15, %24 : vector<8x128xf32>
    %c0_19 = arith.constant 0 : index
    %c0_20 = arith.constant 0 : index
    %26 = vector.load %arg4[%c0_19, %c0_20] : memref<8x1xf32, #tpu.memory_space<vmem>>, vector<8x1xf32>
    %27 = vector.broadcast %26 : vector<8x1xf32> to vector<8x128xf32>
    %28 = arith.addf %25, %27 : vector<8x128xf32>
    %29 = vector.shape_cast %28 : vector<8x128xf32> to vector<1x8x128xf32>
    %c0_21 = arith.constant 0 : index
    %c0_22 = arith.constant 0 : index
    %c0_23 = arith.constant 0 : index
    %30 = vector.load %arg5[%c0_21, %c0_22, %c0_23] : memref<1x8x128xf32, #tpu.memory_space<vmem>>, vector<1x8x128xf32>
    tpu.vector_store %arg5[%c0_21, %c0_22, %c0_23], %29 {strides = array<i32>} : memref<1x8x128xf32, #tpu.memory_space<vmem>>, vector<1x8x128xf32>,
    return
  }
  func.func @transform_0(%arg0: i32) -> (i32, i32) {
    %c0_i32 = arith.constant 0 : i32
    %c0_i32_0 = arith.constant 0 : i32
    %c0_i32_1 = arith.constant 0 : i32
    return %c0_i32, %c0_i32_0 : i32, i32
  }
  func.func @transform_1(%arg0: i32) -> (i32, i32, i32) {
    %c0_i32 = arith.constant 0 : i32
    %c0_i32_0 = arith.constant 0 : i32
    %c0_i32_1 = arith.constant 0 : i32
    return %arg0, %c0_i32, %c0_i32_0 : i32, i32, i32
  }
  func.func @transform_2(%arg0: i32) -> (i32, i32, i32) {
    %c0_i32 = arith.constant 0 : i32
    %c0_i32_0 = arith.constant 0 : i32
    %c0_i32_1 = arith.constant 0 : i32
    %c0_i32_2 = arith.constant 0 : i32
    return %c0_i32, %c0_i32_0, %c0_i32_1 : i32, i32, i32
  }
  func.func @transform_3(%arg0: i32) -> (i32, i32) {
    %c0_i32 = arith.constant 0 : i32
    %c0_i32_0 = arith.constant 0 : i32
    %c0_i32_1 = arith.constant 0 : i32
    return %c0_i32, %c0_i32_0 : i32, i32
  }
  func.func @transform_4(%arg0: i32) -> (i32, i32, i32) {
    %c0_i32 = arith.constant 0 : i32
    %c0_i32_0 = arith.constant 0 : i32
    %c0_i32_1 = arith.constant 0 : i32
    return %arg0, %c0_i32, %c0_i32_0 : i32, i32, i32
  }
}

</mosaic_0001>

<bundles_post_ra>
// kernel: tpu_custom_call.1
= control target key start
LH: loop header
LB: loop body
LE: loop exit
PB: predicated region body
PF: predicated region fallthrough
CT: control target
= control target key end

     0   :  { %9 = vsyncpa [#allocation3], 0  ;;  %s1260_s0 = inlined_call_operand.hbm [shape: f32[128,128], index: 0, kind: input, shape index: {}]   ;;  %s1261_s1 = inlined_call_operand.vmem [shape: f32[2,4,128], index: 1, kind: input, shape index: {}]   ;;  %s1262_s2 = inlined_call_operand.vmem [shape: f32[3,8,4], index: 2, kind: input, shape index: {}]   ;;  %s1263_s3 = inlined_call_operand.vmem [shape: f32[8,1], index: 3, kind: input, shape index: {}]   ;;  %s1264_s4 = inlined_call_operand.hbm [shape: f32[2,8,128], index: 4, kind: output, shape index: {}]  }
   0x1   :  { %10 = vsyncpa [#allocation4], 0 }
   0x2   :  { %12 = vsyncpa [#allocation4 + $0x1], 0  ;;  %s1078_s15 = smov 0   ;;  %s1080_s16 = smov 0  }
   0x3   :  { %s1082_s17 = smov 0   ;;  %s1084_s18 = smov 0  }
   0x4 LB: > { %s1099_s19 = sadd.s32 4294967295, %s1043_s18   ;;  %s699_s20 = sadd.s32 4294967294, %s1043_s18   ;;  %s1043_s18 = sphi %s1084_s18, %s1280_s18   ;;  %s1039_s17 = sphi %s1082_s17, %s1279_s17   ;;  %s1035_s16 = sphi %s1080_s16, %s1278_s16   ;;  %s1031_s15 = sphi %s1078_s15, %s1277_s15  }
   0x5   : > { %s1103_s21 = sadd.s32 1, %s1043_s18   ;;  %s114_s22 = sadd.s32 1, %s1039_s17 }
   0x6   : > { %s111_s23 = ssub.s32 %s1043_s18, %s1103_s21  ;;  %p124_p0 = scmp.ne.s32.totalorder %s1039_s17, %s1035_s16 }
   0x7   : > { %p112_p1 = scmp.eq.s32.totalorder %s111_s23, 0  ;;  %p125_p2 = scmp.eq.s32.totalorder %s1099_s19, 1 }
   0x8   : > { %p130_p3 = scmp.ne.s32.totalorder %s1035_s16, %s1031_s15  ;;  %p131_p4 = scmp.eq.s32.totalorder %s699_s20, 1 }
   0x9   : > { %s1114_s24 = scalar_select %p112_p1, %s1039_s17, %s114_s22  }
   0xa   : > { %p1116_p5 = por %p125_p2, %p124_p0  ;;  %p1120_p6 = por %p131_p4, %p130_p3 }
   0xb   : > { %p700_p7 = scmp.ge.s32.totalorder %s1043_s18, 1  ;;  %p138_p8 = scmp.lt.s32.totalorder %s1043_s18, 3 }
   0xc   : > { %s1268_s25 = scalar_select %p1116_p5, 1, 0 }
   0xd   : > { %s1269_s26 = scalar_select %p1120_p6, 1, 0 }
   0xe   : > { %p1265_p9 = scmp.eq.s32.totalorder %s1099_s19, 0  ;;  %p1127_p10 = pnand %p700_p7, %p138_p8 }
   0xf   : > { %s1045_s28 = smov [#allocation2]   ;;  %s949_s7 = scalar_lea.hbm %s1260_s0, 2048 }
  0x10   : > { %s1270_s27 = scalar_select %p1127_p10, 1, 0 }
  0x11   : > { %s150_s29 = sshll.u32 %s1045_s28, 4  ;;  %p898_p11 = pneg %p1127_p10  ;;  %s151_s29 = int_to_ptr.vmem [resolvable:$true] %s150_s29 }
  0x12   : > { %p950_p13 = scmp.ne.s32.totalorder %s1260_s0, %s949_s7  ;;  %p956_p3 = scmp.lt.u32.totalorder %s949_s7, %s1260_s0 }
  0x13   : > { %p1135_p12 = pnand %p1265_p9, %p898_p11 }
  0x15   : > { %p951_p0 = pneg %p1135_p12 }
  0x17   : > { %p952_p1 = pnand %p951_p0, %p950_p13 }
  0x19   : > { %p953_p2 = pneg %p952_p1 }
  0x1b   : > { %p958_p4 = pnand %p956_p3, %p953_p2 }
  0x1d   : > { %961 = shalt.err (!%p958_p4)
}
  0x1e   : > { %s962_s12 = scalar_lea.vmem %s151_s29, 2048  ;;  %p970_p9 = scmp.lt.s32.totalorder %s151_s29, %s151_s29 }
  0x1f   : > { %p963_p7 = scmp.ne.s32.totalorder %s151_s29, %s962_s12  ;;  %p971_p6 = scmp.lt.s32.totalorder %s962_s12, %s962_s12 }
  0x21   : > { %p965_p8 = pnand %p963_p7, %p951_p0  ;;  %p972_p5 = por %p971_p6, %p970_p9 }
  0x23   : > { %p966_p11 = pneg %p965_p8 }
  0x25   : > { %p973_p10 = pnand %p972_p5, %p966_p11 }
  0x27   : > { %976 = shalt.err (!%p973_p10)
}
  0x28   : > { %s1046_s13 = smov 128   ;;  %s1047_s14 = smov 8  }
  0x29   : > { %901 = dma.hbm_to_vmem [thread:$0]  (!%p1135_p12), %s1260_s0, 2048, %s151_s29, [#allocation3], %s1046_s13, %s1046_s13, %s1047_s14  }
  0x2a   : > { %p1272_p13 = scmp.ne.s32.totalorder %s1270_s27, 0 }
  0x2b   : > { %p1273_p1 = scmp.eq.s32.totalorder (!%p1272_p13), %s1099_s19, 0 }
  0x2c   : > { %179 = sbr.rel (%p1272_p13) target bundleno = 786 (0x312), region = 36 }
  0x33   : > { %1022 = dma.done.wait (%p1273_p1), [#allocation3], 2048   ;;  %p1274_p0 = pmov %p1273_p1 }
  0x34   : > { %v1048_v0 = vmov 0.0|0.0   ;;  %vm1049_vm0 = vmmov 0   ;;  %v1050_v1 = vmov 0.0   ;;  %v208_v2 = vld [vmem:[#allocation2] sm:$0xff]  ;;  %v209_v3 = vld [vmem:[#allocation2 + $0x8] sm:$0xff]  ;;  %v210_v4 = vld [vmem:[#allocation2 + $0x10] sm:$0xff] }
  0x35   : > { %1024 = vsyncadd (%p1274_p0), [#allocation3], 4294965248  ;;  %844 = vmatprep.subr.bf16.mxu0 %v1048_v0  ;;  %791 = vmatprep.mubr.msk.f32.mxu0 %vm1049_vm0, %v1050_v1  ;;  %v845_v5 = vpack.c.bf16 %v209_v3, %v208_v2  ;;  %v211_v6 = vld [vmem:[#allocation2 + $0x18] sm:$0xff]  ;;  %v212_v8 = vld [vmem:[#allocation2 + $0x20] sm:$0xff]  ;;  %p204_p5 = scmp.lt.s32.totalorder %s1099_s19, 1  ;;  %vm305_vm1 = vcmask 1043456  }
  0x36   : > { %794 = vmatprep.subr.mxu1 %v1050_v1  ;;  %796 = vmatprep.mubr.msk.f32.mxu1 %vm1049_vm0, %v1050_v1  ;;  %v848_v7 = vpack.c.bf16 %v211_v6, %v210_v4  ;;  %v213_v9 = vld [vmem:[#allocation2 + $0x28] sm:$0xff]  ;;  %v214_v11 = vld [vmem:[#allocation2 + $0x30] sm:$0xff]  ;;  %v215_v12 = vld [vmem:[#allocation2 + $0x38] sm:$0xff]  ;;  %vm301_vm2 = vcmask 31744   ;;  %v1051_v35 = vmov 0   ;;  %s201_s13 = sand.u32 1, %s1035_s16  }
  0x37   : > { %846 = vmatpush3.bf16.msra.mxu0 %v845_v5  ;;  %v851_v10 = vpack.c.bf16 %v213_v9, %v212_v8  ;;  %v854_v13 = vpack.c.bf16 %v215_v12, %v214_v11  ;;  %v216_v14 = vld [vmem:[#allocation2 + $0x40] sm:$0xff]  ;;  %v217_v15 = vld [vmem:[#allocation2 + $0x48] sm:$0xff]  ;;  %v218_v17 = vld [vmem:[#allocation2 + $0x50] sm:$0xff]  ;;  %s205_s23 = scalar_select %p204_p5, %s1099_s19, 1  ;;  %948 = vset.pattern.permute.xlu0 %v1051_v35 }
  0x38   : > { %847 = vmatprep.subr.bf16.mxu0 %v1048_v0  ;;  %v857_v16 = vpack.c.bf16 %v217_v15, %v216_v14  ;;  %v219_v18 = vld [vmem:[#allocation2 + $0x58] sm:$0xff]  ;;  %v220_v20 = vld [vmem:[#allocation2 + $0x60] sm:$0xff]  ;;  %v221_v21 = vld [vmem:[#allocation2 + $0x68] sm:$0xff]  ;;  %s705_s14 = sshll.u32 %s201_s13, 3  ;;  %s716_s20 = sshll.u32 %s1099_s19, 7 }
  0x39   : > { %v860_v19 = vpack.c.bf16 %v219_v18, %v218_v17  ;;  %v863_v22 = vpack.c.bf16 %v221_v21, %v220_v20  ;;  %v222_v23 = vld [vmem:[#allocation2 + $0x70] sm:$0xff]  ;;  %v223_v24 = vld [vmem:[#allocation2 + $0x78] sm:$0xff]  ;;  %s706_s27 = sshll.u32 %s205_s23, 2  ;;  %v707_v32 = vld [vmem:[%s1262_s2 + $0x8] sm:$0xff]  ;;  %s203_s22 = scalar_lea.vmem [#allocation5], %s705_s14 }
  0x3a   : > { %v866_v25 = vpack.c.bf16 %v223_v24, %v222_v23  ;;  %s207_s30 = scalar_lea.vmem %s1261_s1, %s706_s27  ;;  %v225_v33 = vld [vmem:[%s1262_s2] sm:$0xff]  ;;  %v712_v45 = vld [vmem:[%s1262_s2 + $0x10] sm:$0xff]  ;;  %s628_s23 = sshll.u32 %s203_s22, 4  ;;  %s1220_s23 = int_to_ptr.vmem [resolvable:$true] %s628_s23 }
  0x3b   : > { %849 = vmatpush3.bf16.msra.mxu0 %v848_v7  ;;  %v224_v26 = vld [vmem:[%s207_s30] sm:$0xf]  ;;  %s1218_s29 = scalar_lea.hbm %s1264_s4, %s716_s20  ;;  %s615_s30 = scalar_lea.sflag [#allocation4], %s201_s13 }
  0x3c   : > { %850 = vmatprep.subr.bf16.mxu0 %v1048_v0  ;;  %v296_v27 = vmul.f32 0.05, %v224_v26  ;;  %v606_v34 = vld [vmem:[%s1263_s3] sm:$0xff]  ;;  %s977_s5 = scalar_lea.vmem %s1220_s23, 128  ;;  %p1275_p9 = scmp.ne.s32.totalorder %s1268_s25, 0 }
  0x3d   : > { %609 = vperm.xlu0 %948, %v606_v34   ;;  %p978_p6 = scmp.ne.s32.totalorder %s1220_s23, %s977_s5  ;;  %s1052_s19 = smov [#allocation5]  }
  0x3e   : > { %s981_s6 = sshll.u32 %s1052_s19, 4  ;;  %s982_s6 = int_to_ptr.vmem [resolvable:$false] %s981_s6 }
  0x3f   : > { %852 = vmatpush3.bf16.msra.mxu0 %v851_v10  ;;  %p979_p10 = pnand %p978_p6, %p1275_p9  ;;  %s983_s7 = scalar_lea.vmem %s982_s6, 256 }
  0x40   : > { %853 = vmatprep.subr.bf16.mxu0 %v1048_v0  ;;  %p984_p2 = scmp.lt.s32.totalorder %s1220_s23, %s982_s6  ;;  %p985_p3 = scmp.lt.s32.totalorder %s983_s7, %s977_s5 }
  0x41   : > { %p980_p12 = pneg %p979_p10 }
  0x42   : > { %p986_p4 = por %p985_p3, %p984_p2 }
  0x43   : > { %855 = vmatpush3.bf16.msra.mxu0 %v854_v13 }
  0x44   : > { %856 = vmatprep.subr.bf16.mxu0 %v1048_v0  ;;  %p987_p7 = pnand %p986_p4, %p980_p12 }
  0x47   : > { %858 = vmatpush3.bf16.msra.mxu0 %v857_v16 }
  0x48   : > { %859 = vmatprep.subr.bf16.mxu0 %v1048_v0 }
  0x4b   : > { %861 = vmatpush3.bf16.msra.mxu0 %v860_v19 }
  0x4c   : > { %862 = vmatprep.subr.bf16.mxu0 %v1048_v0 }
  0x4f   : > { %864 = vmatpush3.bf16.msra.mxu0 %v863_v22 }
  0x50   : > { %865 = vmatprep.subr.bf16.mxu0 %v1048_v0 }
  0x53   : > { %867 = vmatpush3.bf16.msra.mxu0 %v866_v25 }
  0x54   : > { %839 = vmatprep.subr.mxu0 %v1050_v1 }
  0x56   : > { %792 = vmatmul.mubr.f32.vlgmr.msra.gmra.mrb[0].mxu0 %v224_v26 }
  0x57   : > { %841 = vmatprep.mubr.msk.f32.mxu0 %vm1049_vm0, %v1050_v1 }
  0xbc   : > { %v610_v47 = vpop.permute.xlu0 %609 }
 0x129   : > { %v292_v28 = vpop.f32.mrb[0].mxu0 }
 0x12a   : > { %v297_v29 = vmul.f32 0.95, %v292_v28  ;;  %v793_v30 = vpop.f32.mrb[1].mxu0 }
 0x12c   : > { %v298_v31 = vadd.f32 %v297_v29, %v296_v27 }
 0x12e   : > { %795 = vmatpush3.msk.msra.mxu1 %vm305_vm1, %v298_v31 }
 0x12f   : > { %797 = vmatmul.mubr.msk.f32.vlgmr.msra.gmra.mrb[0].mxu1 %vm301_vm2, %v707_v32  ;;  %799 = vmatprep.subr.mxu1 %v1050_v1 }
 0x130   : > { %800 = vmatpush3.msk.msra.mxu1 %vm305_vm1, %v224_v26  ;;  %801 = vmatprep.mubr.msk.f32.mxu1 %vm1049_vm0, %v1050_v1 }
 0x131   : > { %868 = vmatprep.subr.bf16.mxu1 %v1048_v0 }
 0x133   : > { %802 = vmatmul.mubr.msk.f32.vlgmr.msra.gmra.mrb[2].mxu1 %vm301_vm2, %v225_v33 }
 0x134   : > { %870 = vmatpush3.bf16.msra.mxu1 %v845_v5  ;;  %836 = vmatprep.mubr.msk.f32.mxu1 %vm1049_vm0, %v1050_v1 }
 0x135   : > { %871 = vmatprep.subr.bf16.mxu1 %v1048_v0 }
 0x138   : > { %873 = vmatpush3.bf16.msra.mxu1 %v848_v7 }
 0x139   : > { %874 = vmatprep.subr.bf16.mxu1 %v1048_v0 }
 0x13c   : > { %876 = vmatpush3.bf16.msra.mxu1 %v851_v10 }
 0x13d   : > { %877 = vmatprep.subr.bf16.mxu1 %v1048_v0 }
 0x140   : > { %879 = vmatpush3.bf16.msra.mxu1 %v854_v13 }
 0x141   : > { %880 = vmatprep.subr.bf16.mxu1 %v1048_v0 }
 0x144   : > { %882 = vmatpush3.bf16.msra.mxu1 %v857_v16 }
 0x145   : > { %883 = vmatprep.subr.bf16.mxu1 %v1048_v0 }
 0x148   : > { %885 = vmatpush3.bf16.msra.mxu1 %v860_v19 }
 0x149   : > { %886 = vmatprep.subr.bf16.mxu1 %v1048_v0 }
 0x14c   : > { %888 = vmatpush3.bf16.msra.mxu1 %v863_v22 }
 0x14d   : > { %889 = vmatprep.subr.bf16.mxu1 %v1048_v0 }
 0x150   : > { %891 = vmatpush3.bf16.msra.mxu1 %v866_v25 }
 0x153   : > { %837 = vmatmul.mubr.f32.vlgmr.msra.gmra.mrb[4].mxu1 %v298_v31 }
 0x202   : > { %v375_v36 = vpop.f32.mrb[0].mxu1 }
 0x203   : > { %v798_v37 = vpop.f32.mrb[1].mxu1 }
 0x206   : > { %v451_v38 = vpop.f32.mrb[2].mxu1 }
 0x207   : > { %v452_v39 = vadd.f32 %v451_v38, %v375_v36  ;;  %v803_v40 = vpop.f32.mrb[3].mxu1 }
 0x226   : > { %v521_v41 = vpop.f32.mrb[4].mxu1 }
 0x227   : > { %v525_v42 = vmul.f32 0.95, %v521_v41  ;;  %v838_v43 = vpop.f32.mrb[5].mxu1 }
 0x229   : > { %v526_v44 = vadd.f32 %v525_v42, %v296_v27 }
 0x22b   : > { %840 = vmatpush3.msk.msra.mxu0 %vm305_vm1, %v526_v44 }
 0x22c   : > { %842 = vmatmul.mubr.msk.f32.vlgmr.msra.gmra.mrb[2].mxu0 %vm301_vm2, %v712_v45 }
 0x2ff   : > { %v601_v46 = vpop.f32.mrb[2].mxu0 }
 0x300   : > { %v605_v48 = vadd.f32 %v601_v46, %v452_v39  ;;  %v843_v49 = vpop.f32.mrb[3].mxu0 }
 0x302   : > { %v612_v50 = vadd.f32 %v610_v47, %v605_v48 }
 0x304   : > { %613 = vst [vmem:[%s203_s22] sm:$0xff] %v612_v50 }
 0x305   : > { %990 = shalt.err (!%p987_p7)
}
 0x306   : > { %s991_s8 = scalar_lea.hbm %s1218_s29, 128  ;;  %s995_s11 = scalar_lea.hbm %s1264_s4, 256 }
 0x307   : > { %p992_p8 = scmp.ne.s32.totalorder %s1218_s29, %s991_s8  ;;  %p996_p1 = scmp.lt.u32.totalorder %s1218_s29, %s1264_s4 }
 0x308   : > { %p997_p0 = scmp.lt.u32.totalorder %s995_s11, %s991_s8  ;;  %p999_p6 = scmp.lt.u32.totalorder %s991_s8, %s1218_s29 }
 0x309   : > { %p993_p11 = pnand %p992_p8, %p1275_p9 }
 0x30a   : > { %p998_p5 = por %p997_p0, %p996_p1 }
 0x30b   : > { %p994_p13 = pneg %p993_p11 }
 0x30c   : > { %p1000_p10 = por %p999_p6, %p998_p5 }
 0x30e   : > { %p1001_p12 = pnand %p1000_p10, %p994_p13 }
 0x310   : > { %1004 = shalt.err (!%p1001_p12)
}
 0x311   : > { %896 = dma.vmem_to_hbm [thread:$0]  (%p1275_p9), %s1220_s23, 128, %s1218_s29, %s615_s30  }
 0x312 PF: > { %p908_p2 = scmp.ge.s32.totalorder %s1043_s18, 2  ;;  %s640_s14 = sand.u32 1, %s1031_s15  }
 0x313   : > { %p1276_p3 = scmp.ne.s32.totalorder %s1269_s26, 0  ;;  %s641_s20 = scalar_lea.sflag [#allocation4], %s640_s14 }
 0x315   : > { %p903_p4 = pnand %p908_p2, %p1276_p3 }
 0x317   : > { %1026 = dma.done.wait (!%p903_p4), %s641_s20, 128  }
 0x318   : > { %1028 = vsyncadd (!%p903_p4), %s641_s20, 4294967168  ;;  %p15_p7 = scmp.ge.s32.totalorder %s1103_s21, 4   ;;  %s1277_s15 = smov %s1035_s16 }
 0x319   : > { %s1278_s16 = smov %s1039_s17  ;;  %s1279_s17 = smov %s1114_s24 }
 0x31a   : > { %s1280_s18 = smov %s1103_s21  ;;  %17 = sbr.rel (!%p15_p7) target bundleno = 4 (0x4), region = 78 }
 0x321   :  { %646 = vsyncpa [#allocation3], 1 }
 0x322   :  { %648 = vsyncpa [#allocation3 + $0x1], 1 }
 0x323   :  { %649 = vsyncpa [#allocation4], 1 }
 0x324   :  { %651 = vsyncpa [#allocation4 + $0x1], 1 }

</bundles_post_ra>
